<compile_context>
chip_gen: v5e
topology: v5e:2x2
jax: 0.10.0
libtpu: 0.0.40
codegen_flags: <defaults>
</compile_context>

<pallas_src>
import functools
import math

import jax
import jax.numpy as jnp
import numpy as np
from jax import lax
from jax.experimental import pallas as pl
from jax.experimental.pallas import tpu as pltpu

# ---- problem sizes (small, consistent with the module) ----
B = 2          # batch
S = 8          # sequence length
D_MODEL = 32   # d_model
N_HEADS = 4    # n_heads
D_FF = 64      # d_ff
HEAD_DIM = D_MODEL // N_HEADS
LN_EPS = 1e-5


def encoder_layer_kernel(
    x_ref,                      # (nb, S, D)
    wqkv_ref, bqkv_ref,         # (D, 3D), (1, 3D)   fused QKV projection
    wo_ref, bo_ref,             # (D, D), (1, D)
    g1_ref, be1_ref,            # LayerNorm1 gamma/beta (1, D)
    w1_ref, b1_ref,             # FFN linear1: (D, D_FF), (1, D_FF)
    w2_ref, b2_ref,             # FFN linear2: (D_FF, D), (1, D)
    g2_ref, be2_ref,            # LayerNorm2 gamma/beta (1, D)
    out_ref,                    # (nb, S, D)
    *, nb,
):
    rows = nb * S
    # Flatten (nb, S, D) -> (nb*S, D); S == 8 so each batch slab is exactly one
    # sublane tile and the merge is layout-aligned.
    x2d = x_ref[...].reshape(rows, D_MODEL).astype(jnp.float32)

    # ---- fused QKV projection: one (rows, D) x (D, 3D) MXU push ----
    qkv = jnp.dot(x2d, wqkv_ref[...], preferred_element_type=jnp.float32) + bqkv_ref[...]
    scale = 1.0 / math.sqrt(HEAD_DIM)
    q = qkv[:, :D_MODEL] * scale            # fold softmax scale into q once
    k = qkv[:, D_MODEL:2 * D_MODEL]
    v = qkv[:, 2 * D_MODEL:]

    # ---- per-batch, per-head scaled dot-product attention (all in vregs) ----
    ctx_rows = []
    for b in range(nb):                     # static, fully unrolled (nb <= 2)
        qb = q[b * S:(b + 1) * S]
        kb = k[b * S:(b + 1) * S]
        vb = v[b * S:(b + 1) * S]
        head_outs = []
        for h in range(N_HEADS):            # static, fully unrolled
            lo, hi = h * HEAD_DIM, (h + 1) * HEAD_DIM
            qh, kh, vh = qb[:, lo:hi], kb[:, lo:hi], vb[:, lo:hi]
            # contraction on the last dim of both operands (no explicit .T)
            scores = lax.dot_general(qh, kh, (((1,), (1,)), ((), ())),
                                     preferred_element_type=jnp.float32)  # (S, S)
            m = jnp.max(scores, axis=-1, keepdims=True)
            p = jnp.exp(scores - m)
            inv = pl.reciprocal(jnp.sum(p, axis=-1, keepdims=True), approx=True)
            p = p * inv
            head_outs.append(jnp.dot(p, vh, preferred_element_type=jnp.float32))
        ctx_rows.append(jnp.concatenate(head_outs, axis=-1))       # (S, D)
    ctx = ctx_rows[0] if nb == 1 else jnp.concatenate(ctx_rows, axis=0)  # (rows, D)

    # ---- output projection ----
    attn_out = jnp.dot(ctx, wo_ref[...],
                       preferred_element_type=jnp.float32) + bo_ref[...]

    # ---- residual + LayerNorm1 (dropout = identity in eval mode) ----
    y1 = x2d + attn_out
    mu1 = jnp.mean(y1, axis=-1, keepdims=True)
    c1 = y1 - mu1
    var1 = jnp.mean(c1 * c1, axis=-1, keepdims=True)
    n1 = c1 * lax.rsqrt(var1 + LN_EPS) * g1_ref[...] + be1_ref[...]

    # ---- feed-forward (ReLU, dropout = identity) ----
    h1 = jnp.dot(n1, w1_ref[...], preferred_element_type=jnp.float32) + b1_ref[...]
    h1 = jnp.maximum(h1, 0.0)
    ff = jnp.dot(h1, w2_ref[...], preferred_element_type=jnp.float32) + b2_ref[...]

    # ---- residual + LayerNorm2 ----
    y2 = n1 + ff
    mu2 = jnp.mean(y2, axis=-1, keepdims=True)
    c2 = y2 - mu2
    var2 = jnp.mean(c2 * c2, axis=-1, keepdims=True)
    n2 = c2 * lax.rsqrt(var2 + LN_EPS) * g2_ref[...] + be2_ref[...]

    out_ref[...] = n2.reshape(nb, S, D_MODEL).astype(out_ref.dtype)


PARAM_ORDER = ("wqkv", "bqkv", "wo", "bo", "g1", "be1",
               "w1", "b1", "w2", "b2", "g2", "be2")


def make_params(key):
    """Deterministic parameter init mirroring the PyTorch module shapes.

    Weights are stored transposed to (in, out) so the kernel computes x @ W.
    Q/K/V are fused into a single (D, 3D) weight / (1, 3D) bias.
    """
    ks = jax.random.split(key, 12)

    def u(k, shape, fan_in):
        b = 1.0 / math.sqrt(fan_in)
        return jax.random.uniform(k, shape, jnp.float32, -b, b)

    wq = u(ks[0], (D_MODEL, D_MODEL), D_MODEL)
    wk = u(ks[1], (D_MODEL, D_MODEL), D_MODEL)
    wv = u(ks[2], (D_MODEL, D_MODEL), D_MODEL)
    bq = u(ks[3], (1, D_MODEL), D_MODEL)
    bk = u(ks[4], (1, D_MODEL), D_MODEL)
    bv = u(ks[5], (1, D_MODEL), D_MODEL)

    return dict(
        wqkv=jnp.concatenate([wq, wk, wv], axis=1),     # (D, 3D)
        bqkv=jnp.concatenate([bq, bk, bv], axis=1),     # (1, 3D)
        wo=u(ks[6], (D_MODEL, D_MODEL), D_MODEL),
        bo=u(ks[7], (1, D_MODEL), D_MODEL),
        g1=jnp.ones((1, D_MODEL), jnp.float32),
        be1=jnp.zeros((1, D_MODEL), jnp.float32),
        w1=u(ks[8], (D_MODEL, D_FF), D_MODEL),
        b1=u(ks[9], (1, D_FF), D_MODEL),
        w2=u(ks[10], (D_FF, D_MODEL), D_FF),
        b2=u(ks[11], (1, D_MODEL), D_FF),
        g2=jnp.ones((1, D_MODEL), jnp.float32),
        be2=jnp.zeros((1, D_MODEL), jnp.float32),
    )


def _split_batch_across_cores():
    """v7x has 2 TensorCores/chip: keep grid=(B,) so each core gets one batch
    element.  v5e/v6e are single-core: collapse the grid into one step."""
    try:
        kind = jax.devices()[0].device_kind.lower()
    except Exception:
        return False
    return "v7" in kind


@functools.partial(jax.jit, static_argnames=("split_batch",))
def encoder_layer_pallas(x, params, split_batch=False):
    b, s, d = x.shape
    flat = [params[name] for name in PARAM_ORDER]

    def full_spec(arr):
        nd = arr.ndim
        # grid-invariant weights: constant block index -> stays resident.
        return pl.BlockSpec(arr.shape, lambda i, _nd=nd: (0,) * _nd)

    if split_batch:
        # v7x: one batch element per grid step, megacore-parallel.
        grid = (b,)
        nb = 1
        x_spec = pl.BlockSpec((1, s, d), lambda i: (i, 0, 0))
        out_spec = pl.BlockSpec((1, s, d), lambda i: (i, 0, 0))
        dims = ("parallel",)
    else:
        # v5e/v6e: single TensorCore -> single grid step over the whole batch.
        grid = (1,)
        nb = b
        x_spec = pl.BlockSpec((b, s, d), lambda i: (0, 0, 0))
        out_spec = pl.BlockSpec((b, s, d), lambda i: (0, 0, 0))
        dims = ("arbitrary",)

    in_specs = [x_spec] + [full_spec(a) for a in flat]

    # Advisory cost estimate for XLA scheduling of this latency-bound call.
    flops = int(2 * b * s * d * (3 * d + d + 2 * D_FF)
                + 4 * b * N_HEADS * s * s * HEAD_DIM)
    transcendentals = int(b * N_HEADS * s * s + 3 * b * s)
    bytes_accessed = int(4 * (2 * b * s * d
                              + sum(int(np.prod(a.shape)) for a in flat)))

    return pl.pallas_call(
        functools.partial(encoder_layer_kernel, nb=nb),
        out_shape=jax.ShapeDtypeStruct((b, s, d), x.dtype),
        grid_spec=pltpu.PrefetchScalarGridSpec(
            num_scalar_prefetch=0,
            grid=grid,
            in_specs=in_specs,
            out_specs=out_spec,
        ),
        compiler_params=pltpu.CompilerParams(dimension_semantics=dims),
        cost_estimate=pl.CostEstimate(flops=flops,
                                      transcendentals=transcendentals,
                                      bytes_accessed=bytes_accessed),
    )(x, *flat)


def encoder_layer_ref(x, p):
    """Pure-JAX reference (eval-mode PyTorch semantics) for verification."""
    def layernorm(y, g, b):
        mu = jnp.mean(y, axis=-1, keepdims=True)
        var = jnp.mean((y - mu) ** 2, axis=-1, keepdims=True)
        return (y - mu) / jnp.sqrt(var + LN_EPS) * g + b

    qkv = x @ p["wqkv"] + p["bqkv"]
    q = qkv[..., :D_MODEL]
    k = qkv[..., D_MODEL:2 * D_MODEL]
    v = qkv[..., 2 * D_MODEL:]
    Bx, Sx, Dx = x.shape
    qh = q.reshape(Bx, Sx, N_HEADS, HEAD_DIM).transpose(0, 2, 1, 3)
    kh = k.reshape(Bx, Sx, N_HEADS, HEAD_DIM).transpose(0, 2, 1, 3)
    vh = v.reshape(Bx, Sx, N_HEADS, HEAD_DIM).transpose(0, 2, 1, 3)
    scores = jnp.einsum("bhqd,bhkd->bhqk", qh, kh) / math.sqrt(HEAD_DIM)
    probs = jax.nn.softmax(scores, axis=-1)
    ctx = jnp.einsum("bhqk,bhkd->bhqd", probs, vh)
    ctx = ctx.transpose(0, 2, 1, 3).reshape(Bx, Sx, Dx)
    attn_out = ctx @ p["wo"] + p["bo"]
    n1 = layernorm(x + attn_out, p["g1"], p["be1"])
    ff = jnp.maximum(n1 @ p["w1"] + p["b1"], 0.0) @ p["w2"] + p["b2"]
    return layernorm(n1 + ff, p["g2"], p["be2"])


if __name__ == "__main__":
    key = jax.random.PRNGKey(0)
    kx, kp = jax.random.split(key)
    x = jax.random.normal(kx, (B, S, D_MODEL), jnp.float32)
    params = make_params(kp)

    split_batch = _split_batch_across_cores()
    out = encoder_layer_pallas(x, params, split_batch=split_batch)
    out = jax.block_until_ready(out)

    ref = encoder_layer_ref(x, params)
    # approx reciprocal (EUP) in the softmax shifts results slightly; keep a
    # modestly relaxed tolerance.
    np.testing.assert_allclose(np.asarray(out), np.asarray(ref), rtol=2e-3, atol=2e-3)

    print("KERNEL_OK")
</pallas_src>

<mosaic_0001>
module attributes {stable_mosaic.version = 11 : i64} {
  func.func @encoder_layer_kernel(%arg0: i32, %arg1: memref<2x8x32xf32, #tpu.memory_space<vmem>>, %arg2: memref<32x96xf32, #tpu.memory_space<vmem>>, %arg3: memref<1x96xf32, #tpu.memory_space<vmem>>, %arg4: memref<32x32xf32, #tpu.memory_space<vmem>>, %arg5: memref<1x32xf32, #tpu.memory_space<vmem>>, %arg6: memref<1x32xf32, #tpu.memory_space<vmem>>, %arg7: memref<1x32xf32, #tpu.memory_space<vmem>>, %arg8: memref<32x64xf32, #tpu.memory_space<vmem>>, %arg9: memref<1x64xf32, #tpu.memory_space<vmem>>, %arg10: memref<64x32xf32, #tpu.memory_space<vmem>>, %arg11: memref<1x32xf32, #tpu.memory_space<vmem>>, %arg12: memref<1x32xf32, #tpu.memory_space<vmem>>, %arg13: memref<1x32xf32, #tpu.memory_space<vmem>>, %arg14: memref<2x8x32xf32, #tpu.memory_space<vmem>>) attributes {dimension_semantics = [#tpu.dimension_semantics<arbitrary>], iteration_bounds = array<i64: 1>, scalar_prefetch = 0 : i64, scratch_operands = 0 : i64, tpu.core_type = #tpu.core_type<tc>, window_params = [{pipeline_mode = #tpu.pipeline_mode<synchronous>, transform_indices = @transform_0, window_bounds = array<i64: 2, 8, 32>}, {pipeline_mode = #tpu.pipeline_mode<synchronous>, transform_indices = @transform_1, window_bounds = array<i64: 32, 96>}, {pipeline_mode = #tpu.pipeline_mode<synchronous>, transform_indices = @transform_2, window_bounds = array<i64: 1, 96>}, {pipeline_mode = #tpu.pipeline_mode<synchronous>, transform_indices = @transform_3, window_bounds = array<i64: 32, 32>}, {pipeline_mode = #tpu.pipeline_mode<synchronous>, transform_indices = @transform_4, window_bounds = array<i64: 1, 32>}, {pipeline_mode = #tpu.pipeline_mode<synchronous>, transform_indices = @transform_5, window_bounds = array<i64: 1, 32>}, {pipeline_mode = #tpu.pipeline_mode<synchronous>, transform_indices = @transform_6, window_bounds = array<i64: 1, 32>}, {pipeline_mode = #tpu.pipeline_mode<synchronous>, transform_indices = @transform_7, window_bounds = array<i64: 32, 64>}, {pipeline_mode = #tpu.pipeline_mode<synchronous>, transform_indices = @transform_8, window_bounds = array<i64: 1, 64>}, {pipeline_mode = #tpu.pipeline_mode<synchronous>, transform_indices = @transform_9, window_bounds = array<i64: 64, 32>}, {pipeline_mode = #tpu.pipeline_mode<synchronous>, transform_indices = @transform_10, window_bounds = array<i64: 1, 32>}, {pipeline_mode = #tpu.pipeline_mode<synchronous>, transform_indices = @transform_11, window_bounds = array<i64: 1, 32>}, {pipeline_mode = #tpu.pipeline_mode<synchronous>, transform_indices = @transform_12, window_bounds = array<i64: 1, 32>}, {pipeline_mode = #tpu.pipeline_mode<synchronous>, transform_indices = @transform_13, window_bounds = array<i64: 2, 8, 32>}]} {
    %c0 = arith.constant 0 : index
    %c0_0 = arith.constant 0 : index
    %c0_1 = arith.constant 0 : index
    %0 = vector.load %arg1[%c0, %c0_0, %c0_1] : memref<2x8x32xf32, #tpu.memory_space<vmem>>, vector<2x8x32xf32>
    %1 = vector.shape_cast %0 : vector<2x8x32xf32> to vector<16x32xf32>
    %c0_2 = arith.constant 0 : index
    %c0_3 = arith.constant 0 : index
    %2 = vector.load %arg2[%c0_2, %c0_3] : memref<32x96xf32, #tpu.memory_space<vmem>>, vector<32x96xf32>
    %cst = arith.constant dense<0.000000e+00> : vector<16x96xf32>
    %3 = tpu.matmul %1, %2, %cst {dimension_numbers = #tpu.dot_dimension_numbers<[1], [0], [0], [1], [0, 0, 1, 1], [], []>} : vector<16x32xf32>, vector<32x96xf32>, vector<16x96xf32> -> vector<16x96xf32>
    %c0_4 = arith.constant 0 : index
    %c0_5 = arith.constant 0 : index
    %4 = vector.load %arg3[%c0_4, %c0_5] : memref<1x96xf32, #tpu.memory_space<vmem>>, vector<1x96xf32>
    %5 = vector.broadcast %4 : vector<1x96xf32> to vector<16x96xf32>
    %6 = arith.addf %3, %5 : vector<16x96xf32>
    %7 = vector.extract_strided_slice %6 {offsets = [0, 0], sizes = [16, 32], strides = [1, 1]} : vector<16x96xf32> to vector<16x32xf32>
    %cst_6 = arith.constant 0.353553385 : f32
    %8 = vector.broadcast %cst_6 : f32 to vector<16x32xf32>
    %9 = arith.mulf %7, %8 : vector<16x32xf32>
    %10 = vector.extract_strided_slice %6 {offsets = [0, 32], sizes = [16, 32], strides = [1, 1]} : vector<16x96xf32> to vector<16x32xf32>
    %11 = vector.extract_strided_slice %6 {offsets = [0, 64], sizes = [16, 32], strides = [1, 1]} : vector<16x96xf32> to vector<16x32xf32>
    %12 = vector.extract_strided_slice %9 {offsets = [0, 0], sizes = [8, 32], strides = [1, 1]} : vector<16x32xf32> to vector<8x32xf32>
    %13 = vector.extract_strided_slice %10 {offsets = [0, 0], sizes = [8, 32], strides = [1, 1]} : vector<16x32xf32> to vector<8x32xf32>
    %14 = vector.extract_strided_slice %11 {offsets = [0, 0], sizes = [8, 32], strides = [1, 1]} : vector<16x32xf32> to vector<8x32xf32>
    %15 = vector.extract_strided_slice %12 {offsets = [0, 0], sizes = [8, 8], strides = [1, 1]} : vector<8x32xf32> to vector<8x8xf32>
    %16 = vector.extract_strided_slice %13 {offsets = [0, 0], sizes = [8, 8], strides = [1, 1]} : vector<8x32xf32> to vector<8x8xf32>
    %17 = vector.extract_strided_slice %14 {offsets = [0, 0], sizes = [8, 8], strides = [1, 1]} : vector<8x32xf32> to vector<8x8xf32>
    %cst_7 = arith.constant dense<0.000000e+00> : vector<8x8xf32>
    %18 = tpu.matmul %15, %16, %cst_7 {dimension_numbers = #tpu.dot_dimension_numbers<[1], [1], [0], [0], [0, 0, 1, 0], [], []>} : vector<8x8xf32>, vector<8x8xf32>, vector<8x8xf32> -> vector<8x8xf32>
    %cst_8 = arith.constant dense<0xFF800000> : vector<8xf32>
    %19 = vector.multi_reduction <maximumf>, %18, %cst_8 [1] : vector<8x8xf32> to vector<8xf32>
    %20 = vector.shape_cast %19 : vector<8xf32> to vector<8x1xf32>
    %21 = vector.broadcast %20 : vector<8x1xf32> to vector<8x8xf32>
    %22 = arith.subf %18, %21 : vector<8x8xf32>
    %23 = math.exp %22 : vector<8x8xf32>
    %cst_9 = arith.constant dense<0.000000e+00> : vector<8xf32>
    %24 = vector.multi_reduction <add>, %23, %cst_9 [1] : vector<8x8xf32> to vector<8xf32>
    %25 = vector.shape_cast %24 : vector<8xf32> to vector<8x1xf32>
    %26 = tpu.reciprocal %25 {approx = true} : vector<8x1xf32> -> vector<8x1xf32>
    %27 = vector.broadcast %26 : vector<8x1xf32> to vector<8x8xf32>
    %28 = arith.mulf %23, %27 : vector<8x8xf32>
    %cst_10 = arith.constant dense<0.000000e+00> : vector<8x8xf32>
    %29 = tpu.matmul %28, %17, %cst_10 {dimension_numbers = #tpu.dot_dimension_numbers<[1], [0], [0], [1], [0, 0, 1, 1], [], []>} : vector<8x8xf32>, vector<8x8xf32>, vector<8x8xf32> -> vector<8x8xf32>
    %30 = vector.extract_strided_slice %12 {offsets = [0, 8], sizes = [8, 8], strides = [1, 1]} : vector<8x32xf32> to vector<8x8xf32>
    %31 = vector.extract_strided_slice %13 {offsets = [0, 8], sizes = [8, 8], strides = [1, 1]} : vector<8x32xf32> to vector<8x8xf32>
    %32 = vector.extract_strided_slice %14 {offsets = [0, 8], sizes = [8, 8], strides = [1, 1]} : vector<8x32xf32> to vector<8x8xf32>
    %cst_11 = arith.constant dense<0.000000e+00> : vector<8x8xf32>
    %33 = tpu.matmul %30, %31, %cst_11 {dimension_numbers = #tpu.dot_dimension_numbers<[1], [1], [0], [0], [0, 0, 1, 0], [], []>} : vector<8x8xf32>, vector<8x8xf32>, vector<8x8xf32> -> vector<8x8xf32>
    %cst_12 = arith.constant dense<0xFF800000> : vector<8xf32>
    %34 = vector.multi_reduction <maximumf>, %33, %cst_12 [1] : vector<8x8xf32> to vector<8xf32>
    %35 = vector.shape_cast %34 : vector<8xf32> to vector<8x1xf32>
    %36 = vector.broadcast %35 : vector<8x1xf32> to vector<8x8xf32>
    %37 = arith.subf %33, %36 : vector<8x8xf32>
    %38 = math.exp %37 : vector<8x8xf32>
    %cst_13 = arith.constant dense<0.000000e+00> : vector<8xf32>
    %39 = vector.multi_reduction <add>, %38, %cst_13 [1] : vector<8x8xf32> to vector<8xf32>
    %40 = vector.shape_cast %39 : vector<8xf32> to vector<8x1xf32>
    %41 = tpu.reciprocal %40 {approx = true} : vector<8x1xf32> -> vector<8x1xf32>
    %42 = vector.broadcast %41 : vector<8x1xf32> to vector<8x8xf32>
    %43 = arith.mulf %38, %42 : vector<8x8xf32>
    %cst_14 = arith.constant dense<0.000000e+00> : vector<8x8xf32>
    %44 = tpu.matmul %43, %32, %cst_14 {dimension_numbers = #tpu.dot_dimension_numbers<[1], [0], [0], [1], [0, 0, 1, 1], [], []>} : vector<8x8xf32>, vector<8x8xf32>, vector<8x8xf32> -> vector<8x8xf32>
    %45 = vector.extract_strided_slice %12 {offsets = [0, 16], sizes = [8, 8], strides = [1, 1]} : vector<8x32xf32> to vector<8x8xf32>
    %46 = vector.extract_strided_slice %13 {offsets = [0, 16], sizes = [8, 8], strides = [1, 1]} : vector<8x32xf32> to vector<8x8xf32>
    %47 = vector.extract_strided_slice %14 {offsets = [0, 16], sizes = [8, 8], strides = [1, 1]} : vector<8x32xf32> to vector<8x8xf32>
    %cst_15 = arith.constant dense<0.000000e+00> : vector<8x8xf32>
    %48 = tpu.matmul %45, %46, %cst_15 {dimension_numbers = #tpu.dot_dimension_numbers<[1], [1], [0], [0], [0, 0, 1, 0], [], []>} : vector<8x8xf32>, vector<8x8xf32>, vector<8x8xf32> -> vector<8x8xf32>
    %cst_16 = arith.constant dense<0xFF800000> : vector<8xf32>
    %49 = vector.multi_reduction <maximumf>, %48, %cst_16 [1] : vector<8x8xf32> to vector<8xf32>
    %50 = vector.shape_cast %49 : vector<8xf32> to vector<8x1xf32>
    %51 = vector.broadcast %50 : vector<8x1xf32> to vector<8x8xf32>
    %52 = arith.subf %48, %51 : vector<8x8xf32>
    %53 = math.exp %52 : vector<8x8xf32>
    %cst_17 = arith.constant dense<0.000000e+00> : vector<8xf32>
    %54 = vector.multi_reduction <add>, %53, %cst_17 [1] : vector<8x8xf32> to vector<8xf32>
    %55 = vector.shape_cast %54 : vector<8xf32> to vector<8x1xf32>
    %56 = tpu.reciprocal %55 {approx = true} : vector<8x1xf32> -> vector<8x1xf32>
    %57 = vector.broadcast %56 : vector<8x1xf32> to vector<8x8xf32>
    %58 = arith.mulf %53, %57 : vector<8x8xf32>
    %cst_18 = arith.constant dense<0.000000e+00> : vector<8x8xf32>
    %59 = tpu.matmul %58, %47, %cst_18 {dimension_numbers = #tpu.dot_dimension_numbers<[1], [0], [0], [1], [0, 0, 1, 1], [], []>} : vector<8x8xf32>, vector<8x8xf32>, vector<8x8xf32> -> vector<8x8xf32>
    %60 = vector.extract_strided_slice %12 {offsets = [0, 24], sizes = [8, 8], strides = [1, 1]} : vector<8x32xf32> to vector<8x8xf32>
    %61 = vector.extract_strided_slice %13 {offsets = [0, 24], sizes = [8, 8], strides = [1, 1]} : vector<8x32xf32> to vector<8x8xf32>
    %62 = vector.extract_strided_slice %14 {offsets = [0, 24], sizes = [8, 8], strides = [1, 1]} : vector<8x32xf32> to vector<8x8xf32>
    %cst_19 = arith.constant dense<0.000000e+00> : vector<8x8xf32>
    %63 = tpu.matmul %60, %61, %cst_19 {dimension_numbers = #tpu.dot_dimension_numbers<[1], [1], [0], [0], [0, 0, 1, 0], [], []>} : vector<8x8xf32>, vector<8x8xf32>, vector<8x8xf32> -> vector<8x8xf32>
    %cst_20 = arith.constant dense<0xFF800000> : vector<8xf32>
    %64 = vector.multi_reduction <maximumf>, %63, %cst_20 [1] : vector<8x8xf32> to vector<8xf32>
    %65 = vector.shape_cast %64 : vector<8xf32> to vector<8x1xf32>
    %66 = vector.broadcast %65 : vector<8x1xf32> to vector<8x8xf32>
    %67 = arith.subf %63, %66 : vector<8x8xf32>
    %68 = math.exp %67 : vector<8x8xf32>
    %cst_21 = arith.constant dense<0.000000e+00> : vector<8xf32>
    %69 = vector.multi_reduction <add>, %68, %cst_21 [1] : vector<8x8xf32> to vector<8xf32>
    %70 = vector.shape_cast %69 : vector<8xf32> to vector<8x1xf32>
    %71 = tpu.reciprocal %70 {approx = true} : vector<8x1xf32> -> vector<8x1xf32>
    %72 = vector.broadcast %71 : vector<8x1xf32> to vector<8x8xf32>
    %73 = arith.mulf %68, %72 : vector<8x8xf32>
    %cst_22 = arith.constant dense<0.000000e+00> : vector<8x8xf32>
    %74 = tpu.matmul %73, %62, %cst_22 {dimension_numbers = #tpu.dot_dimension_numbers<[1], [0], [0], [1], [0, 0, 1, 1], [], []>} : vector<8x8xf32>, vector<8x8xf32>, vector<8x8xf32> -> vector<8x8xf32>
    %75 = tpu.concatenate %29, %44, %59, %74 in 1 : vector<8x8xf32>, vector<8x8xf32>, vector<8x8xf32>, vector<8x8xf32> -> vector<8x32xf32>
    %76 = vector.extract_strided_slice %9 {offsets = [8, 0], sizes = [8, 32], strides = [1, 1]} : vector<16x32xf32> to vector<8x32xf32>
    %77 = vector.extract_strided_slice %10 {offsets = [8, 0], sizes = [8, 32], strides = [1, 1]} : vector<16x32xf32> to vector<8x32xf32>
    %78 = vector.extract_strided_slice %11 {offsets = [8, 0], sizes = [8, 32], strides = [1, 1]} : vector<16x32xf32> to vector<8x32xf32>
    %79 = vector.extract_strided_slice %76 {offsets = [0, 0], sizes = [8, 8], strides = [1, 1]} : vector<8x32xf32> to vector<8x8xf32>
    %80 = vector.extract_strided_slice %77 {offsets = [0, 0], sizes = [8, 8], strides = [1, 1]} : vector<8x32xf32> to vector<8x8xf32>
    %81 = vector.extract_strided_slice %78 {offsets = [0, 0], sizes = [8, 8], strides = [1, 1]} : vector<8x32xf32> to vector<8x8xf32>
    %cst_23 = arith.constant dense<0.000000e+00> : vector<8x8xf32>
    %82 = tpu.matmul %79, %80, %cst_23 {dimension_numbers = #tpu.dot_dimension_numbers<[1], [1], [0], [0], [0, 0, 1, 0], [], []>} : vector<8x8xf32>, vector<8x8xf32>, vector<8x8xf32> -> vector<8x8xf32>
    %cst_24 = arith.constant dense<0xFF800000> : vector<8xf32>
    %83 = vector.multi_reduction <maximumf>, %82, %cst_24 [1] : vector<8x8xf32> to vector<8xf32>
    %84 = vector.shape_cast %83 : vector<8xf32> to vector<8x1xf32>
    %85 = vector.broadcast %84 : vector<8x1xf32> to vector<8x8xf32>
    %86 = arith.subf %82, %85 : vector<8x8xf32>
    %87 = math.exp %86 : vector<8x8xf32>
    %cst_25 = arith.constant dense<0.000000e+00> : vector<8xf32>
    %88 = vector.multi_reduction <add>, %87, %cst_25 [1] : vector<8x8xf32> to vector<8xf32>
    %89 = vector.shape_cast %88 : vector<8xf32> to vector<8x1xf32>
    %90 = tpu.reciprocal %89 {approx = true} : vector<8x1xf32> -> vector<8x1xf32>
    %91 = vector.broadcast %90 : vector<8x1xf32> to vector<8x8xf32>
    %92 = arith.mulf %87, %91 : vector<8x8xf32>
    %cst_26 = arith.constant dense<0.000000e+00> : vector<8x8xf32>
    %93 = tpu.matmul %92, %81, %cst_26 {dimension_numbers = #tpu.dot_dimension_numbers<[1], [0], [0], [1], [0, 0, 1, 1], [], []>} : vector<8x8xf32>, vector<8x8xf32>, vector<8x8xf32> -> vector<8x8xf32>
    %94 = vector.extract_strided_slice %76 {offsets = [0, 8], sizes = [8, 8], strides = [1, 1]} : vector<8x32xf32> to vector<8x8xf32>
    %95 = vector.extract_strided_slice %77 {offsets = [0, 8], sizes = [8, 8], strides = [1, 1]} : vector<8x32xf32> to vector<8x8xf32>
    %96 = vector.extract_strided_slice %78 {offsets = [0, 8], sizes = [8, 8], strides = [1, 1]} : vector<8x32xf32> to vector<8x8xf32>
    %cst_27 = arith.constant dense<0.000000e+00> : vector<8x8xf32>
    %97 = tpu.matmul %94, %95, %cst_27 {dimension_numbers = #tpu.dot_dimension_numbers<[1], [1], [0], [0], [0, 0, 1, 0], [], []>} : vector<8x8xf32>, vector<8x8xf32>, vector<8x8xf32> -> vector<8x8xf32>
    %cst_28 = arith.constant dense<0xFF800000> : vector<8xf32>
    %98 = vector.multi_reduction <maximumf>, %97, %cst_28 [1] : vector<8x8xf32> to vector<8xf32>
    %99 = vector.shape_cast %98 : vector<8xf32> to vector<8x1xf32>
    %100 = vector.broadcast %99 : vector<8x1xf32> to vector<8x8xf32>
    %101 = arith.subf %97, %100 : vector<8x8xf32>
    %102 = math.exp %101 : vector<8x8xf32>
    %cst_29 = arith.constant dense<0.000000e+00> : vector<8xf32>
    %103 = vector.multi_reduction <add>, %102, %cst_29 [1] : vector<8x8xf32> to vector<8xf32>
    %104 = vector.shape_cast %103 : vector<8xf32> to vector<8x1xf32>
    %105 = tpu.reciprocal %104 {approx = true} : vector<8x1xf32> -> vector<8x1xf32>
    %106 = vector.broadcast %105 : vector<8x1xf32> to vector<8x8xf32>
    %107 = arith.mulf %102, %106 : vector<8x8xf32>
    %cst_30 = arith.constant dense<0.000000e+00> : vector<8x8xf32>
    %108 = tpu.matmul %107, %96, %cst_30 {dimension_numbers = #tpu.dot_dimension_numbers<[1], [0], [0], [1], [0, 0, 1, 1], [], []>} : vector<8x8xf32>, vector<8x8xf32>, vector<8x8xf32> -> vector<8x8xf32>
    %109 = vector.extract_strided_slice %76 {offsets = [0, 16], sizes = [8, 8], strides = [1, 1]} : vector<8x32xf32> to vector<8x8xf32>
    %110 = vector.extract_strided_slice %77 {offsets = [0, 16], sizes = [8, 8], strides = [1, 1]} : vector<8x32xf32> to vector<8x8xf32>
    %111 = vector.extract_strided_slice %78 {offsets = [0, 16], sizes = [8, 8], strides = [1, 1]} : vector<8x32xf32> to vector<8x8xf32>
    %cst_31 = arith.constant dense<0.000000e+00> : vector<8x8xf32>
    %112 = tpu.matmul %109, %110, %cst_31 {dimension_numbers = #tpu.dot_dimension_numbers<[1], [1], [0], [0], [0, 0, 1, 0], [], []>} : vector<8x8xf32>, vector<8x8xf32>, vector<8x8xf32> -> vector<8x8xf32>
    %cst_32 = arith.constant dense<0xFF800000> : vector<8xf32>
    %113 = vector.multi_reduction <maximumf>, %112, %cst_32 [1] : vector<8x8xf32> to vector<8xf32>
    %114 = vector.shape_cast %113 : vector<8xf32> to vector<8x1xf32>
    %115 = vector.broadcast %114 : vector<8x1xf32> to vector<8x8xf32>
    %116 = arith.subf %112, %115 : vector<8x8xf32>
    %117 = math.exp %116 : vector<8x8xf32>
    %cst_33 = arith.constant dense<0.000000e+00> : vector<8xf32>
    %118 = vector.multi_reduction <add>, %117, %cst_33 [1] : vector<8x8xf32> to vector<8xf32>
    %119 = vector.shape_cast %118 : vector<8xf32> to vector<8x1xf32>
    %120 = tpu.reciprocal %119 {approx = true} : vector<8x1xf32> -> vector<8x1xf32>
    %121 = vector.broadcast %120 : vector<8x1xf32> to vector<8x8xf32>
    %122 = arith.mulf %117, %121 : vector<8x8xf32>
    %cst_34 = arith.constant dense<0.000000e+00> : vector<8x8xf32>
    %123 = tpu.matmul %122, %111, %cst_34 {dimension_numbers = #tpu.dot_dimension_numbers<[1], [0], [0], [1], [0, 0, 1, 1], [], []>} : vector<8x8xf32>, vector<8x8xf32>, vector<8x8xf32> -> vector<8x8xf32>
    %124 = vector.extract_strided_slice %76 {offsets = [0, 24], sizes = [8, 8], strides = [1, 1]} : vector<8x32xf32> to vector<8x8xf32>
    %125 = vector.extract_strided_slice %77 {offsets = [0, 24], sizes = [8, 8], strides = [1, 1]} : vector<8x32xf32> to vector<8x8xf32>
    %126 = vector.extract_strided_slice %78 {offsets = [0, 24], sizes = [8, 8], strides = [1, 1]} : vector<8x32xf32> to vector<8x8xf32>
    %cst_35 = arith.constant dense<0.000000e+00> : vector<8x8xf32>
    %127 = tpu.matmul %124, %125, %cst_35 {dimension_numbers = #tpu.dot_dimension_numbers<[1], [1], [0], [0], [0, 0, 1, 0], [], []>} : vector<8x8xf32>, vector<8x8xf32>, vector<8x8xf32> -> vector<8x8xf32>
    %cst_36 = arith.constant dense<0xFF800000> : vector<8xf32>
    %128 = vector.multi_reduction <maximumf>, %127, %cst_36 [1] : vector<8x8xf32> to vector<8xf32>
    %129 = vector.shape_cast %128 : vector<8xf32> to vector<8x1xf32>
    %130 = vector.broadcast %129 : vector<8x1xf32> to vector<8x8xf32>
    %131 = arith.subf %127, %130 : vector<8x8xf32>
    %132 = math.exp %131 : vector<8x8xf32>
    %cst_37 = arith.constant dense<0.000000e+00> : vector<8xf32>
    %133 = vector.multi_reduction <add>, %132, %cst_37 [1] : vector<8x8xf32> to vector<8xf32>
    %134 = vector.shape_cast %133 : vector<8xf32> to vector<8x1xf32>
    %135 = tpu.reciprocal %134 {approx = true} : vector<8x1xf32> -> vector<8x1xf32>
    %136 = vector.broadcast %135 : vector<8x1xf32> to vector<8x8xf32>
    %137 = arith.mulf %132, %136 : vector<8x8xf32>
    %cst_38 = arith.constant dense<0.000000e+00> : vector<8x8xf32>
    %138 = tpu.matmul %137, %126, %cst_38 {dimension_numbers = #tpu.dot_dimension_numbers<[1], [0], [0], [1], [0, 0, 1, 1], [], []>} : vector<8x8xf32>, vector<8x8xf32>, vector<8x8xf32> -> vector<8x8xf32>
    %139 = tpu.concatenate %93, %108, %123, %138 in 1 : vector<8x8xf32>, vector<8x8xf32>, vector<8x8xf32>, vector<8x8xf32> -> vector<8x32xf32>
    %140 = tpu.concatenate %75, %139 in 0 : vector<8x32xf32>, vector<8x32xf32> -> vector<16x32xf32>
    %c0_39 = arith.constant 0 : index
    %c0_40 = arith.constant 0 : index
    %141 = vector.load %arg4[%c0_39, %c0_40] : memref<32x32xf32, #tpu.memory_space<vmem>>, vector<32x32xf32>
    %cst_41 = arith.constant dense<0.000000e+00> : vector<16x32xf32>
    %142 = tpu.matmul %140, %141, %cst_41 {dimension_numbers = #tpu.dot_dimension_numbers<[1], [0], [0], [1], [0, 0, 1, 1], [], []>} : vector<16x32xf32>, vector<32x32xf32>, vector<16x32xf32> -> vector<16x32xf32>
    %c0_42 = arith.constant 0 : index
    %c0_43 = arith.constant 0 : index
    %143 = vector.load %arg5[%c0_42, %c0_43] : memref<1x32xf32, #tpu.memory_space<vmem>>, vector<1x32xf32>
    %144 = vector.broadcast %143 : vector<1x32xf32> to vector<16x32xf32>
    %145 = arith.addf %142, %144 : vector<16x32xf32>
    %146 = arith.addf %1, %145 : vector<16x32xf32>
    %cst_44 = arith.constant dense<0.000000e+00> : vector<16xf32>
    %147 = vector.multi_reduction <add>, %146, %cst_44 [1] : vector<16x32xf32> to vector<16xf32>
    %148 = vector.shape_cast %147 : vector<16xf32> to vector<16x1xf32>
    %cst_45 = arith.constant 3.200000e+01 : f32
    %149 = vector.broadcast %cst_45 : f32 to vector<16x1xf32>
    %150 = arith.divf %148, %149 : vector<16x1xf32>
    %151 = vector.broadcast %150 : vector<16x1xf32> to vector<16x32xf32>
    %152 = arith.subf %146, %151 : vector<16x32xf32>
    %153 = arith.mulf %152, %152 : vector<16x32xf32>
    %cst_46 = arith.constant dense<0.000000e+00> : vector<16xf32>
    %154 = vector.multi_reduction <add>, %153, %cst_46 [1] : vector<16x32xf32> to vector<16xf32>
    %155 = vector.shape_cast %154 : vector<16xf32> to vector<16x1xf32>
    %cst_47 = arith.constant 3.200000e+01 : f32
    %156 = vector.broadcast %cst_47 : f32 to vector<16x1xf32>
    %157 = arith.divf %155, %156 : vector<16x1xf32>
    %cst_48 = arith.constant 9.99999974E-6 : f32
    %158 = vector.broadcast %cst_48 : f32 to vector<16x1xf32>
    %159 = arith.addf %157, %158 : vector<16x1xf32>
    %160 = math.rsqrt %159 : vector<16x1xf32>
    %161 = vector.broadcast %160 : vector<16x1xf32> to vector<16x32xf32>
    %162 = arith.mulf %152, %161 : vector<16x32xf32>
    %c0_49 = arith.constant 0 : index
    %c0_50 = arith.constant 0 : index
    %163 = vector.load %arg6[%c0_49, %c0_50] : memref<1x32xf32, #tpu.memory_space<vmem>>, vector<1x32xf32>
    %164 = vector.broadcast %163 : vector<1x32xf32> to vector<16x32xf32>
    %165 = arith.mulf %162, %164 : vector<16x32xf32>
    %c0_51 = arith.constant 0 : index
    %c0_52 = arith.constant 0 : index
    %166 = vector.load %arg7[%c0_51, %c0_52] : memref<1x32xf32, #tpu.memory_space<vmem>>, vector<1x32xf32>
    %167 = vector.broadcast %166 : vector<1x32xf32> to vector<16x32xf32>
    %168 = arith.addf %165, %167 : vector<16x32xf32>
    %c0_53 = arith.constant 0 : index
    %c0_54 = arith.constant 0 : index
    %169 = vector.load %arg8[%c0_53, %c0_54] : memref<32x64xf32, #tpu.memory_space<vmem>>, vector<32x64xf32>
    %cst_55 = arith.constant dense<0.000000e+00> : vector<16x64xf32>
    %170 = tpu.matmul %168, %169, %cst_55 {dimension_numbers = #tpu.dot_dimension_numbers<[1], [0], [0], [1], [0, 0, 1, 1], [], []>} : vector<16x32xf32>, vector<32x64xf32>, vector<16x64xf32> -> vector<16x64xf32>
    %c0_56 = arith.constant 0 : index
    %c0_57 = arith.constant 0 : index
    %171 = vector.load %arg9[%c0_56, %c0_57] : memref<1x64xf32, #tpu.memory_space<vmem>>, vector<1x64xf32>
    %172 = vector.broadcast %171 : vector<1x64xf32> to vector<16x64xf32>
    %173 = arith.addf %170, %172 : vector<16x64xf32>
    %cst_58 = arith.constant 0.000000e+00 : f32
    %174 = vector.broadcast %cst_58 : f32 to vector<16x64xf32>
    %175 = arith.maximumf %173, %174 : vector<16x64xf32>
    %c0_59 = arith.constant 0 : index
    %c0_60 = arith.constant 0 : index
    %176 = vector.load %arg10[%c0_59, %c0_60] : memref<64x32xf32, #tpu.memory_space<vmem>>, vector<64x32xf32>
    %cst_61 = arith.constant dense<0.000000e+00> : vector<16x32xf32>
    %177 = tpu.matmul %175, %176, %cst_61 {dimension_numbers = #tpu.dot_dimension_numbers<[1], [0], [0], [1], [0, 0, 1, 1], [], []>} : vector<16x64xf32>, vector<64x32xf32>, vector<16x32xf32> -> vector<16x32xf32>
    %c0_62 = arith.constant 0 : index
    %c0_63 = arith.constant 0 : index
    %178 = vector.load %arg11[%c0_62, %c0_63] : memref<1x32xf32, #tpu.memory_space<vmem>>, vector<1x32xf32>
    %179 = vector.broadcast %178 : vector<1x32xf32> to vector<16x32xf32>
    %180 = arith.addf %177, %179 : vector<16x32xf32>
    %181 = arith.addf %168, %180 : vector<16x32xf32>
    %cst_64 = arith.constant dense<0.000000e+00> : vector<16xf32>
    %182 = vector.multi_reduction <add>, %181, %cst_64 [1] : vector<16x32xf32> to vector<16xf32>
    %183 = vector.shape_cast %182 : vector<16xf32> to vector<16x1xf32>
    %cst_65 = arith.constant 3.200000e+01 : f32
    %184 = vector.broadcast %cst_65 : f32 to vector<16x1xf32>
    %185 = arith.divf %183, %184 : vector<16x1xf32>
    %186 = vector.broadcast %185 : vector<16x1xf32> to vector<16x32xf32>
    %187 = arith.subf %181, %186 : vector<16x32xf32>
    %188 = arith.mulf %187, %187 : vector<16x32xf32>
    %cst_66 = arith.constant dense<0.000000e+00> : vector<16xf32>
    %189 = vector.multi_reduction <add>, %188, %cst_66 [1] : vector<16x32xf32> to vector<16xf32>
    %190 = vector.shape_cast %189 : vector<16xf32> to vector<16x1xf32>
    %cst_67 = arith.constant 3.200000e+01 : f32
    %191 = vector.broadcast %cst_67 : f32 to vector<16x1xf32>
    %192 = arith.divf %190, %191 : vector<16x1xf32>
    %cst_68 = arith.constant 9.99999974E-6 : f32
    %193 = vector.broadcast %cst_68 : f32 to vector<16x1xf32>
    %194 = arith.addf %192, %193 : vector<16x1xf32>
    %195 = math.rsqrt %194 : vector<16x1xf32>
    %196 = vector.broadcast %195 : vector<16x1xf32> to vector<16x32xf32>
    %197 = arith.mulf %187, %196 : vector<16x32xf32>
    %c0_69 = arith.constant 0 : index
    %c0_70 = arith.constant 0 : index
    %198 = vector.load %arg12[%c0_69, %c0_70] : memref<1x32xf32, #tpu.memory_space<vmem>>, vector<1x32xf32>
    %199 = vector.broadcast %198 : vector<1x32xf32> to vector<16x32xf32>
    %200 = arith.mulf %197, %199 : vector<16x32xf32>
    %c0_71 = arith.constant 0 : index
    %c0_72 = arith.constant 0 : index
    %201 = vector.load %arg13[%c0_71, %c0_72] : memref<1x32xf32, #tpu.memory_space<vmem>>, vector<1x32xf32>
    %202 = vector.broadcast %201 : vector<1x32xf32> to vector<16x32xf32>
    %203 = arith.addf %200, %202 : vector<16x32xf32>
    %204 = vector.shape_cast %203 : vector<16x32xf32> to vector<2x8x32xf32>
    %c0_73 = arith.constant 0 : index
    %c0_74 = arith.constant 0 : index
    %c0_75 = arith.constant 0 : index
    %205 = vector.load %arg14[%c0_73, %c0_74, %c0_75] : memref<2x8x32xf32, #tpu.memory_space<vmem>>, vector<2x8x32xf32>
    tpu.vector_store %arg14[%c0_73, %c0_74, %c0_75], %204 {strides = array<i32>} : memref<2x8x32xf32, #tpu.memory_space<vmem>>, vector<2x8x32xf32>,
    return
  }
  func.func @transform_0(%arg0: i32) -> (i32, i32, i32) {
    %c0_i32 = arith.constant 0 : i32
    %c0_i32_0 = arith.constant 0 : i32
    %c0_i32_1 = arith.constant 0 : i32
    %c0_i32_2 = arith.constant 0 : i32
    return %c0_i32, %c0_i32_0, %c0_i32_1 : i32, i32, i32
  }
  func.func @transform_1(%arg0: i32) -> (i32, i32) {
    %c0_i32 = arith.constant 0 : i32
    %c0_i32_0 = arith.constant 0 : i32
    %c0_i32_1 = arith.constant 0 : i32
    return %c0_i32, %c0_i32_0 : i32, i32
  }
  func.func @transform_2(%arg0: i32) -> (i32, i32) {
    %c0_i32 = arith.constant 0 : i32
    %c0_i32_0 = arith.constant 0 : i32
    %c0_i32_1 = arith.constant 0 : i32
    return %c0_i32, %c0_i32_0 : i32, i32
  }
  func.func @transform_3(%arg0: i32) -> (i32, i32) {
    %c0_i32 = arith.constant 0 : i32
    %c0_i32_0 = arith.constant 0 : i32
    %c0_i32_1 = arith.constant 0 : i32
    return %c0_i32, %c0_i32_0 : i32, i32
  }
  func.func @transform_4(%arg0: i32) -> (i32, i32) {
    %c0_i32 = arith.constant 0 : i32
    %c0_i32_0 = arith.constant 0 : i32
    %c0_i32_1 = arith.constant 0 : i32
    return %c0_i32, %c0_i32_0 : i32, i32
  }
  func.func @transform_5(%arg0: i32) -> (i32, i32) {
    %c0_i32 = arith.constant 0 : i32
    %c0_i32_0 = arith.constant 0 : i32
    %c0_i32_1 = arith.constant 0 : i32
    return %c0_i32, %c0_i32_0 : i32, i32
  }
  func.func @transform_6(%arg0: i32) -> (i32, i32) {
    %c0_i32 = arith.constant 0 : i32
    %c0_i32_0 = arith.constant 0 : i32
    %c0_i32_1 = arith.constant 0 : i32
    return %c0_i32, %c0_i32_0 : i32, i32
  }
  func.func @transform_7(%arg0: i32) -> (i32, i32) {
    %c0_i32 = arith.constant 0 : i32
    %c0_i32_0 = arith.constant 0 : i32
    %c0_i32_1 = arith.constant 0 : i32
    return %c0_i32, %c0_i32_0 : i32, i32
  }
  func.func @transform_8(%arg0: i32) -> (i32, i32) {
    %c0_i32 = arith.constant 0 : i32
    %c0_i32_0 = arith.constant 0 : i32
    %c0_i32_1 = arith.constant 0 : i32
    return %c0_i32, %c0_i32_0 : i32, i32
  }
  func.func @transform_9(%arg0: i32) -> (i32, i32) {
    %c0_i32 = arith.constant 0 : i32
    %c0_i32_0 = arith.constant 0 : i32
    %c0_i32_1 = arith.constant 0 : i32
    return %c0_i32, %c0_i32_0 : i32, i32
  }
  func.func @transform_10(%arg0: i32) -> (i32, i32) {
    %c0_i32 = arith.constant 0 : i32
    %c0_i32_0 = arith.constant 0 : i32
    %c0_i32_1 = arith.constant 0 : i32
    return %c0_i32, %c0_i32_0 : i32, i32
  }
  func.func @transform_11(%arg0: i32) -> (i32, i32) {
    %c0_i32 = arith.constant 0 : i32
    %c0_i32_0 = arith.constant 0 : i32
    %c0_i32_1 = arith.constant 0 : i32
    return %c0_i32, %c0_i32_0 : i32, i32
  }
  func.func @transform_12(%arg0: i32) -> (i32, i32) {
    %c0_i32 = arith.constant 0 : i32
    %c0_i32_0 = arith.constant 0 : i32
    %c0_i32_1 = arith.constant 0 : i32
    return %c0_i32, %c0_i32_0 : i32, i32
  }
  func.func @transform_13(%arg0: i32) -> (i32, i32, i32) {
    %c0_i32 = arith.constant 0 : i32
    %c0_i32_0 = arith.constant 0 : i32
    %c0_i32_1 = arith.constant 0 : i32
    %c0_i32_2 = arith.constant 0 : i32
    return %c0_i32, %c0_i32_0, %c0_i32_1 : i32, i32, i32
  }
}

</mosaic_0001>

<bundles_post_ra>
// kernel: encoder_layer_pallas.1
= control target key start
LH: loop header
LB: loop body
LE: loop exit
PB: predicated region body
PF: predicated region fallthrough
CT: control target
= control target key end

     0   :  { %18 = vsyncpa [#allocation3], 0  ;;  %s1565_s0 = inlined_call_operand.hbm [shape: f32[2,8,32], index: 0, kind: input, shape index: {}]   ;;  %s1566_s1 = inlined_call_operand.vmem [shape: f32[32,96], index: 1, kind: input, shape index: {}]   ;;  %s1567_s2 = inlined_call_operand.vmem [shape: f32[1,96], index: 2, kind: input, shape index: {}]   ;;  %s1568_s3 = inlined_call_operand.vmem [shape: f32[32,32], index: 3, kind: input, shape index: {}]   ;;  %s1569_s4 = inlined_call_operand.vmem [shape: f32[1,32], index: 4, kind: input, shape index: {}]   ;;  %s1570_s5 = inlined_call_operand.vmem [shape: f32[1,32], index: 5, kind: input, shape index: {}]   ;;  %s1571_s6 = inlined_call_operand.hbm [shape: f32[1,32], index: 6, kind: input, shape index: {}]   ;;  %s1572_s7 = inlined_call_operand.vmem [shape: f32[32,64], index: 7, kind: input, shape index: {}]   ;;  %s1573_s8 = inlined_call_operand.hbm [shape: f32[1,64], index: 8, kind: input, shape index: {}]   ;;  %s1574_s9 = inlined_call_operand.vmem [shape: f32[64,32], index: 9, kind: input, shape index: {}]   ;;  %s1575_s10 = inlined_call_operand.hbm [shape: f32[1,32], index: 10, kind: input, shape index: {}]   ;;  %s1576_s11 = inlined_call_operand.vmem [shape: f32[1,32], index: 11, kind: input, shape index: {}]   ;;  %s1577_s12 = inlined_call_operand.hbm [shape: f32[1,32], index: 12, kind: input, shape index: {}]   ;;  %s1578_s13 = inlined_call_operand.hbm [shape: f32[2,8,32], index: 13, kind: output, shape index: {}]  }
   0x1   :  { %19 = vsyncpa [#allocation6], 0 }
   0x2   :  { %20 = vsyncpa [#allocation9], 0  ;;  %s50_s27 = sshll.u32 %s1571_s6, 4  ;;  %s51_s27 = int_to_ptr.hbm [resolvable:$true] %s50_s27 }
   0x3   :  { %21 = vsyncpa [#allocation4], 0  ;;  %s1230_s28 = smov [#allocation5]   ;;  %s76_s15 = sshll.u32 %s1575_s10, 4  ;;  %s77_s15 = int_to_ptr.hbm [resolvable:$true] %s76_s15 }
   0x4   :  { %s52_s29 = sshll.u32 %s1230_s28, 4  ;;  %s1231_s16 = smov [#allocation8]   ;;  %s53_s29 = int_to_ptr.vmem [resolvable:$true] %s52_s29 }
   0x5   :  { %55 = dma.hbm_to_vmem [thread:$0]  %s51_s27, 16, %s53_s29, [#allocation6]  }
   0x6   :  { %s78_s17 = sshll.u32 %s1231_s16, 4  ;;  %s26_s20 = sshll.u32 %s1565_s0, 4  ;;  %s79_s17 = int_to_ptr.vmem [resolvable:$true] %s78_s17  ;;  %s27_s20 = int_to_ptr.hbm [resolvable:$true] %s26_s20 }
   0x7   :  { %81 = dma.hbm_to_vmem [thread:$0]  %s77_s15, 16, %s79_s17, [#allocation9]  }
   0x8   :  { %s1232_s6 = smov [#allocation2]   ;;  %s63_s24 = sshll.u32 %s1573_s8, 4  ;;  %s64_s24 = int_to_ptr.hbm [resolvable:$true] %s63_s24 }
   0x9   :  { %s28_s21 = sshll.u32 %s1232_s6, 4  ;;  %s1233_s25 = smov 128   ;;  %s29_s21 = int_to_ptr.vmem [resolvable:$true] %s28_s21 }
   0xa   :  { %s1234_s10 = smov 8   ;;  %s1235_s26 = smov [#allocation7]  }
   0xb   :  { %34 = dma.hbm_to_vmem [thread:$0]  %s27_s20, 256, %s29_s21, [#allocation3], %s1233_s25, %s1233_s25, %s1234_s10  }
   0xc   :  { %s65_s27 = sshll.u32 %s1235_s26, 4  ;;  %s89_s29 = sshll.u32 %s1577_s12, 4  ;;  %s66_s27 = int_to_ptr.vmem [resolvable:$true] %s65_s27  ;;  %s90_s29 = int_to_ptr.hbm [resolvable:$true] %s89_s29 }
   0xd   :  { %68 = dma.hbm_to_vmem [thread:$0]  %s64_s24, 16, %s66_s27, [#allocation6]  }
   0xe   :  { %s1236_s30 = smov [#allocation10]  }
   0xf   :  { %s91_s14 = sshll.u32 %s1236_s30, 4  ;;  %s92_s14 = int_to_ptr.vmem [resolvable:$true] %s91_s14 }
  0x10   :  { %94 = dma.hbm_to_vmem [thread:$0]  %s90_s29, 16, %s92_s14, [#allocation9]  }
  0x11   :  { %1222 = dma.done.wait [#allocation3], 256  }
  0x12   :  { %1223 = vsyncadd [#allocation3], 4294967040 }
  0x13   :  { %1224 = dma.done.wait [#allocation6], 32  }
  0x14   :  { %1225 = vsyncadd [#allocation6], 4294967264 }
  0x15   :  { %1226 = dma.done.wait [#allocation9], 32  }
  0x16   :  { %1227 = vsyncadd [#allocation9], 4294967264  ;;  %v120_v0 = vld [vmem:[%s1566_s1 + $0x18] sm:$0xff]  ;;  %v119_v1 = vld [vmem:[%s1566_s1 + $0x10] sm:$0xff]  ;;  %vm125_vm0 = vcmask 261120   ;;  %s1237_s22 = smov 96  }
  0x17   :  { %144 = vmatpush.msra.mxu0 %v120_v0  ;;  %v118_v2 = vld [vmem:[%s1566_s1 + $0x8] sm:$0xff]  ;;  %v117_v3 = vld [vmem:[%s1566_s1] sm:$0xff]  ;;  %s1238_s1 = smov 120   ;;  %s1239_s23 = smov 64   ;;  %vm160_vm1 = vcmask 64512   ;;  %vm431_vm2 = vcmask 130048  }
  0x18   :  { %v1352_v4 = vld [vmem:[#allocation2] sm:$0xff]  ;;  %s1241_s24 = smov 112   ;;  %s1242_s26 = smov 88   ;;  %v1392_v28 = vld [vmem:[#allocation2 + $0x8] sm:$0xff]  ;;  %vm433_vm3 = vcmask 195584   ;;  %vm863_vm8 = vcmask 523264  }
  0x19   :  { %145 = vmatpush.msra.mxu0 %v119_v1  ;;  %v1359_v5 = vld [vmem:[%s1567_s2] ss:$0 sm:$0xff]  ;;  %s1240_s2 = smov 80   ;;  %s1243_s27 = smov 48  }
  0x1a   :  { %s1244_s0 = smov 72   ;;  %s1245_s28 = smov 56  }
  0x1b   :  { %146 = vmatpush.msra.mxu0 %v118_v2  ;;  %s1246_s29 = smov 104   ;;  %s1247_s30 = smov 40  }
  0x1c   :  { %s1248_s14 = smov 16   ;;  %s1249_s8 = smov 24  }
  0x1d   :  { %147 = vmatpush.msra.mxu0 %v117_v3 }
  0x1e   :  { %974 = vmatmul.msk.f32.vlgmr.msra.gmra.mxu0 %vm125_vm0, %v1352_v4 }
  0x26   :  { %975 = vmatmul.msk.f32.gmra.mxu0 %vm125_vm0, %v1392_v28 }
  0x9b   :  { %v149_v6 = vpop.f32.mrf.mxu0 }
  0x9c   :  { %v1362_v7 = vadd.f32 %v1359_v5, %v149_v6 }
  0x9e   :  { %158 = vrot.lane.b32.xlu0 %v1362_v7, %s1237_s22  ;;  %v1367_v8 = vmul.f32 0.35355338, %v1362_v7 }
  0xa0   :  { %223 = vrot.lane.b32.xlu2 %v1367_v8, %s1238_s1 }
  0xa3   :  { %v152_v35 = vpop.f32.mrf.mxu0 }
  0xa4   :  { %v1401_v36 = vadd.f32 %v1359_v5, %v152_v35 }
  0xa6   :  { %v156_v38 = vmul.f32 0.35355338, %v1401_v36 }
  0xa8   :  { %197 = vrot.lane.b32.xlu2 %v1362_v7, %s1239_s23 }
  0xb0   :  { %290 = vrot.lane.b32.xlu2 %v1362_v7, %s1240_s2 }
  0xb8   :  { %288 = vrot.lane.b32.xlu2 %v1367_v8, %s1241_s24 }
  0xfa   :  { %v224_v9 = vpop.permute.xlu2 %223 }
 0x102   :  { %v198_v10 = vpop.permute.xlu2 %197 }
 0x10a   :  { %v291_v12 = vpop.permute.xlu2 %290 }
 0x110   :  { %v159_v11 = vpop.permute.xlu0 %158 }
 0x111   :  { %976 = vmatpush.xpose.msk.msra.mxu1 %vm160_vm1, %v159_v11 }
 0x112   :  { %v289_v23 = vpop.permute.xlu2 %288 }
 0x114   :  { %977 = vmatmul.msk.f32.vlgmr.msra.gmra.mxu1 %vm160_vm1, %v1367_v8 }
 0x115   :  { %218 = vmatpush.msrb.mxu1 %v198_v10 }
 0x117   :  { %982 = vmatpush.xpose.msk.msra.mxu1 %vm160_vm1, %v291_v12 }
 0x191   :  { %v183_v13 = vpop.f32.mrf.mxu1 }
 0x192   :  { %v186_v14 = vsel %vm160_vm1, %v183_v13, -inf }
 0x193   :  { %187 = vmax.xlane.f32.xlu0 %v186_v14 }
 0x206   :  { %v188_v15 = vpop.xlane.xlu0 %187 }
 0x207   :  { %v189_v16 = vsub.f32 %v183_v13, %v188_v15 }
 0x209   :  { %v190_v17 = vmul.f32 1.442695, %v189_v16 }
 0x20b   :  { %1036 = vpow2.f32 %v190_v17 }
 0x211   :  { %v1037_v18 = vpop.eup %1036 }
 0x212   :  { %v192_v19 = vsel %vm160_vm1, %v1037_v18, 0.0 }
 0x213   :  { %193 = vadd.xlane.f32.xlu1 %v192_v19 }
 0x22c   :  { %225 = vrot.lane.b32.xlu1 %v1362_v7, %s1242_s26 }
 0x286   :  { %v194_v20 = vpop.xlane.xlu1 %193 }
 0x287   :  { %1038 = vrcp.f32 %v194_v20 }
 0x28d   :  { %v1039_v21 = vpop.eup %1038 }
 0x28e   :  { %v196_v22 = vmul.f32 %v1039_v21, %v1037_v18 }
 0x290   :  { %978 = vmatmul.msk.f32.vlgmr.msrb.gmra.mxu1 %vm160_vm1, %v196_v22 }
 0x298   :  { %983 = vmatmul.msk.f32.vlgmr.msra.gmra.mxu1 %vm160_vm1, %v289_v23 }
 0x29e   :  { %v226_v24 = vpop.permute.xlu1 %225 }
 0x29f   :  { %979 = vmatpush.xpose.msk.msra.mxu3 %vm160_vm1, %v226_v24 }
 0x2a2   :  { %980 = vmatmul.msk.f32.vlgmr.msra.gmra.mxu3 %vm160_vm1, %v224_v9 }
 0x30d   :  { %v1389_v25 = vpop.f32.mrf.mxu1 }
 0x315   :  { %v313_v26 = vpop.f32.mrf.mxu1 }
 0x316   :  { %v316_v27 = vsel %vm160_vm1, %v313_v26, -inf }
 0x317   :  { %317 = vmax.xlane.f32.xlu1 %v316_v27 }
 0x325   :  { %v248_v29 = vpop.f32.mrf.mxu3 }
 0x326   :  { %v251_v30 = vsel %vm160_vm1, %v248_v29, -inf }
 0x327   :  { %252 = vmax.xlane.f32.xlu2 %v251_v30 }
 0x330   :  { %327 = vrot.lane.b32.xlu1 %v1362_v7, %s1243_s27 }
 0x338   :  { %500 = vrot.lane.b32.xlu1 %v156_v38, %s1238_s1 }
 0x33f   :  { %355 = vrot.lane.b32.xlu2 %v1362_v7, %s1244_s0 }
 0x340   :  { %565 = vrot.lane.b32.xlu1 %v156_v38, %s1241_s24 }
 0x347   :  { %502 = vrot.lane.b32.xlu2 %v1401_v36, %s1242_s26 }
 0x34f   :  { %632 = vrot.lane.b32.xlu2 %v1401_v36, %s1244_s0 }
 0x38a   :  { %v318_v31 = vpop.xlane.xlu1 %317 }
 0x38b   :  { %v319_v41 = vsub.f32 %v313_v26, %v318_v31 }
 0x38d   :  { %v320_v42 = vmul.f32 1.442695, %v319_v41 }
 0x39a   :  { %v253_v32 = vpop.xlane.xlu2 %252 }
 0x39b   :  { %v254_v33 = vsub.f32 %v248_v29, %v253_v32 }
 0x39d   :  { %v255_v34 = vmul.f32 1.442695, %v254_v33 }
 0x39f   :  { %1040 = vpow2.f32 %v255_v34 }
 0x3a0   :  { %1042 = vpow2.f32 %v320_v42 }
 0x3a2   :  { %v328_v37 = vpop.permute.xlu1 %327  ;;  %v356_v46 = vpop.permute.xlu2 %355 }
 0x3a3   :  { %348 = vmatpush.msrb.mxu3 %v328_v37 }
 0x3a5   :  { %v1041_v39 = vpop.eup %1040 }
 0x3a6   :  { %v257_v40 = vsel %vm160_vm1, %v1041_v39, 0.0  ;;  %v1043_v43 = vpop.eup %1042 }
 0x3a7   :  { %258 = vadd.xlane.f32.xlu0 %v257_v40  ;;  %v322_v44 = vsel %vm160_vm1, %v1043_v43, 0.0 }
 0x3aa   :  { %v503_v48 = vpop.permute.xlu2 %502  ;;  %v501_v54 = vpop.permute.xlu1 %500 }
 0x3b2   :  { %v633_v52 = vpop.permute.xlu2 %632  ;;  %v566_v60 = vpop.permute.xlu1 %565 }
 0x3bb   :  { %262 = vrot.lane.b32.xlu0 %v1362_v7, %s1245_s28 }
 0x3c3   :  { %353 = vrot.lane.b32.xlu0 %v1367_v8, %s1246_s29 }
 0x3cb   :  { %436 = vrot.lane.b32.xlu0 %v1401_v36, %s1237_s22 }
 0x3d3   :  { %567 = vrot.lane.b32.xlu0 %v1401_v36, %s1240_s2  ;;  %s959_s2 = sshll.u32 %s1578_s13, 4  ;;  %s960_s2 = int_to_ptr.hbm [resolvable:$true] %s959_s2 }
 0x3fd   :  { %323 = vadd.xlane.f32.xlu0 %v322_v44 }
 0x411   :  { %630 = vrot.lane.b32.xlu0 %v156_v38, %s1246_s29 }
 0x41a   :  { %v259_v45 = vpop.xlane.xlu0 %258 }
 0x41b   :  { %1044 = vrcp.f32 %v259_v45 }
 0x421   :  { %v1045_v47 = vpop.eup %1044 }
 0x422   :  { %v261_v50 = vmul.f32 %v1045_v47, %v1041_v39 }
 0x42d   :  { %v263_v49 = vpop.permute.xlu0 %262 }
 0x42e   :  { %283 = vmatpush.msra.mxu2 %v263_v49 }
 0x42f   :  { %981 = vmatmul.msk.f32.vlgmr.msra.gmra.mxu2 %vm160_vm1, %v261_v50  ;;  %v713_v50 = vld [vmem:[%s1568_s3 + $0x18] sm:$0xff] }
 0x430   :  { %985 = vmatpush.xpose.msk.msrb.mxu2 %vm160_vm1, %v356_v46 }
 0x434   :  { %991 = vmatpush.xpose.msk.msra.mxu2 %vm160_vm1, %v503_v48 }
 0x435   :  { %v354_v51 = vpop.permute.xlu0 %353 }
 0x437   :  { %986 = vmatmul.msk.f32.vlgmr.msrb.gmra.mxu2 %vm160_vm1, %v354_v51  ;;  %v712_v51 = vld [vmem:[%s1568_s3 + $0x10] sm:$0xff] }
 0x438   :  { %997 = vmatpush.xpose.msk.msrb.mxu2 %vm160_vm1, %v633_v52  ;;  %v711_v52 = vld [vmem:[%s1568_s3 + $0x8] sm:$0xff] }
 0x43d   :  { %v437_v53 = vpop.permute.xlu0 %436 }
 0x43e   :  { %988 = vmatpush.xpose.msk.msra.mxu3 %vm160_vm1, %v437_v53 }
 0x43f   :  { %992 = vmatmul.msk.f32.vlgmr.msra.gmra.mxu2 %vm160_vm1, %v501_v54 }
 0x445   :  { %v568_v55 = vpop.permute.xlu0 %567 }
 0x470   :  { %v324_v56 = vpop.xlane.xlu0 %323 }
 0x471   :  { %1046 = vrcp.f32 %v324_v56 }
 0x477   :  { %v1047_v57 = vpop.eup %1046 }
 0x478   :  { %v326_v58 = vmul.f32 %v1047_v57, %v1043_v43 }
 0x47a   :  { %984 = vmatmul.msk.f32.vlgmr.msrb.gmra.mxu3 %vm160_vm1, %v326_v58 }
 0x47b   :  { %994 = vmatpush.xpose.msk.msrb.mxu3 %vm160_vm1, %v568_v55 }
 0x482   :  { %989 = vmatmul.msk.f32.vlgmr.msra.gmra.mxu3 %vm160_vm1, %v156_v38 }
 0x483   :  { %v631_v59 = vpop.permute.xlu0 %630  ;;  %736 = vmatpush.msra.mxu3 %v713_v50 }
 0x484   :  { %998 = vmatmul.msk.f32.vlgmr.msrb.gmra.mxu2 %vm160_vm1, %v631_v59  ;;  %v710_v59 = vld [vmem:[%s1568_s3] sm:$0xff] }
 0x485   :  { %737 = vmatpush.msra.mxu3 %v712_v51 }
 0x487   :  { %738 = vmatpush.msra.mxu3 %v711_v52  ;;  %v1031_v52 = vld [vmem:[#allocation5] ss:$0 sm:$0xff] }
 0x489   :  { %739 = vmatpush.msra.mxu3 %v710_v59 }
 0x48a   :  { %995 = vmatmul.msk.f32.vlgmr.msrb.gmra.mxu3 %vm160_vm1, %v566_v60 }
 0x4b2   :  { %v285_v61 = vpop.f32.mrf.mxu2 }
 0x4ba   :  { %v378_v62 = vpop.f32.mrf.mxu2 }
 0x4bb   :  { %v381_v63 = vsel %vm160_vm1, %v378_v62, -inf }
 0x4bc   :  { %382 = vmax.xlane.f32.xlu2 %v381_v63 }
 0x4c2   :  { %v525_v0 = vpop.f32.mrf.mxu2 }
 0x4c3   :  { %v528_v1 = vsel %vm160_vm1, %v525_v0, -inf }
 0x4c4   :  { %529 = vmax.xlane.f32.xlu0 %v528_v1 }
 0x4fd   :  { %v350_v2 = vpop.f32.mrf.mxu3 }
 0x505   :  { %v460_v3 = vpop.f32.mrf.mxu3 }
 0x506   :  { %v463_v5 = vsel %vm160_vm1, %v460_v3, -inf }
 0x507   :  { %464 = vmax.xlane.f32.xlu1 %v463_v5  ;;  %v655_v6 = vpop.f32.mrf.mxu2 }
 0x508   :  { %v658_v8 = vsel %vm160_vm1, %v655_v6, -inf }
 0x50d   :  { %v590_v27 = vpop.f32.mrf.mxu3 }
 0x50e   :  { %v593_v29 = vsel %vm160_vm1, %v590_v27, -inf }
 0x50f   :  { %659 = vmax.xlane.f32.xlu1 %v658_v8 }
 0x52f   :  { %v383_v9 = vpop.xlane.xlu2 %382 }
 0x530   :  { %v384_v10 = vsub.f32 %v378_v62, %v383_v9 }
 0x532   :  { %v385_v11 = vmul.f32 1.442695, %v384_v10 }
 0x534   :  { %1048 = vpow2.f32 %v385_v11 }
 0x537   :  { %v530_v12 = vpop.xlane.xlu0 %529 }
 0x538   :  { %v531_v13 = vsub.f32 %v525_v0, %v530_v12 }
 0x53a   :  { %v1049_v14 = vpop.eup %1048  ;;  %v532_v15 = vmul.f32 1.442695, %v531_v13 }
 0x53b   :  { %v387_v16 = vsel %vm160_vm1, %v1049_v14, 0.0 }
 0x53c   :  { %1050 = vpow2.f32 %v532_v15  ;;  %388 = vadd.xlane.f32.xlu0 %v387_v16 }
 0x542   :  { %v1435_v17 = vpop.eup %1050 }
 0x543   :  { %v534_v18 = vsel %vm160_vm1, %v1435_v17, 0.0 }
 0x544   :  { %535 = vadd.xlane.f32.xlu1 %v534_v18 }
 0x550   :  { %392 = vrot.lane.b32.xlu0 %v1362_v7, %s1247_s30 }
 0x558   :  { %604 = vrot.lane.b32.xlu0 %v1401_v36, %s1243_s27 }
 0x55d   :  { %474 = vrot.lane.b32.xlu1 %v1401_v36, %s1239_s23 }
 0x560   :  { %669 = vrot.lane.b32.xlu0 %v1401_v36, %s1247_s30 }
 0x565   :  { %419 = vrot.lane.b32.xlu1 %v285_v61, %s1234_s10 }
 0x568   :  { %423 = vrot.lane.b32.xlu0 %v350_v2, %s1248_s14 }
 0x57a   :  { %v465_v19 = vpop.xlane.xlu1 %464 }
 0x57b   :  { %v466_v7 = vsub.f32 %v460_v3, %v465_v19 }
 0x57d   :  { %v467_v26 = vmul.f32 1.442695, %v466_v7 }
 0x582   :  { %v660_v20 = vpop.xlane.xlu1 %659 }
 0x583   :  { %v661_v21 = vsub.f32 %v655_v6, %v660_v20  ;;  %v1250_v20 = vmov 32.0  }
 0x585   :  { %v662_v22 = vmul.f32 1.442695, %v661_v21 }
 0x587   :  { %1052 = vpow2.f32 %v662_v22 }
 0x588   :  { %1054 = vpow2.f32 %v467_v26 }
 0x58d   :  { %v1447_v23 = vpop.eup %1052 }
 0x58e   :  { %v664_v24 = vsel %vm160_vm1, %v1447_v23, 0.0  ;;  %v1055_v30 = vpop.eup %1054 }
 0x58f   :  { %665 = vadd.xlane.f32.xlu2 %v664_v24  ;;  %v469_v31 = vsel %vm160_vm1, %v1055_v30, 0.0 }
 0x597   :  { %594 = vmax.xlane.f32.xlu2 %v593_v29 }
 0x59f   :  { %470 = vadd.xlane.f32.xlu2 %v469_v31 }
 0x5af   :  { %v389_v32 = vpop.xlane.xlu0 %388 }
 0x5b0   :  { %1056 = vrcp.f32 %v389_v32 }
 0x5b6   :  { %v1057_v33 = vpop.eup %1056 }
 0x5b7   :  { %v391_v34 = vmul.f32 %v1057_v33, %v1049_v14  ;;  %v536_v37 = vpop.xlane.xlu1 %535 }
 0x5c2   :  { %v393_v35 = vpop.permute.xlu0 %392 }
 0x5c3   :  { %413 = vmatpush.msrb.mxu1 %v393_v35 }
 0x5c4   :  { %987 = vmatmul.msk.f32.vlgmr.msrb.gmra.mxu1 %vm160_vm1, %v391_v34 }
 0x5ca   :  { %v605_v39 = vpop.permute.xlu0 %604 }
 0x5cf   :  { %v475_v38 = vpop.permute.xlu1 %474 }
 0x5d0   :  { %495 = vmatpush.msrb.mxu0 %v475_v38  ;;  %v814_v38 = vld [vmem:[%s1572_s7 + $0x10] sm:$0xff] }
 0x5d2   :  { %625 = vmatpush.msra.mxu0 %v605_v39  ;;  %v670_v58 = vpop.permute.xlu0 %669  ;;  %v813_v39 = vld [vmem:[%s1572_s7 + $0x8] sm:$0xff] }
 0x5d7   :  { %v420_v62 = vpop.permute.xlu1 %419 }
 0x5d8   :  { %v430_v0 = vsel %vm160_vm1, %v1389_v25, %v420_v62  ;;  %v1029_v25 = vld [vmem:[%s1569_s4] ss:$0 sm:$0xff] }
 0x5da   :  { %v424_v63 = vpop.permute.xlu0 %423 }
 0x5db   :  { %v432_v1 = vsel %vm431_vm2, %v430_v0, %v424_v63  ;;  %v853_v0 = vld [vmem:[%s1574_s9 + $0x10] sm:$0xff] }
 0x602   :  { %v666_v40 = vpop.xlane.xlu2 %665 }
 0x60a   :  { %v595_v41 = vpop.xlane.xlu2 %594 }
 0x60b   :  { %v596_v42 = vsub.f32 %v590_v27, %v595_v41 }
 0x60d   :  { %v597_v43 = vmul.f32 1.442695, %v596_v42 }
 0x60f   :  { %1058 = vpow2.f32 %v597_v43 }
 0x612   :  { %v471_v44 = vpop.xlane.xlu2 %470 }
 0x613   :  { %1060 = vrcp.f32 %v471_v44 }
 0x614   :  { %1062 = vrcp.f32 %v536_v37  ;;  %v815_v37 = vld [vmem:[%s1572_s7 + $0x18] sm:$0xff] }
 0x615   :  { %v1059_v45 = vpop.eup %1058 }
 0x616   :  { %v599_v46 = vsel %vm160_vm1, %v1059_v45, 0.0 }
 0x617   :  { %600 = vadd.xlane.f32.xlu2 %v599_v46 }
 0x619   :  { %v1061_v47 = vpop.eup %1060 }
 0x61a   :  { %v473_v48 = vmul.f32 %v1061_v47, %v1055_v30  ;;  %v1063_v53 = vpop.eup %1062 }
 0x61b   :  { %v538_v55 = vmul.f32 %v1063_v53, %v1435_v17 }
 0x61c   :  { %990 = vmatmul.msk.f32.vlgmr.msrb.gmra.mxu0 %vm160_vm1, %v473_v48 }
 0x61d   :  { %838 = vmatpush.msrb.mxu0 %v815_v37 }
 0x61f   :  { %839 = vmatpush.msrb.mxu0 %v814_v38 }
 0x621   :  { %840 = vmatpush.msrb.mxu0 %v813_v39 }
 0x62f   :  { %539 = vrot.lane.b32.xlu2 %v1401_v36, %s1245_s28 }
 0x641   :  { %v415_v49 = vpop.f32.mrf.mxu1 }
 0x642   :  { %427 = vrot.lane.b32.xlu1 %v415_v49, %s1249_s8  ;;  %v1030_v49 = vld [vmem:[%s1570_s5] ss:$0 sm:$0xff] }
 0x68a   :  { %v601_v36 = vpop.xlane.xlu2 %600 }
 0x68b   :  { %1064 = vrcp.f32 %v601_v36 }
 0x68c   :  { %1066 = vrcp.f32 %v666_v40 }
 0x68d   :  { %1068 = vrcp.f32 %v1250_v20 }
 0x691   :  { %v1065_v54 = vpop.eup %1064 }
 0x692   :  { %v603_v56 = vmul.f32 %v1065_v54, %v1059_v45  ;;  %v540_v57 = vpop.permute.xlu2 %539  ;;  %v1067_v60 = vpop.eup %1066  ;;  %v858_v54 = vld [vmem:[%s1574_s9 + $0x38] sm:$0xff] }
 0x693   :  { %560 = vmatpush.msra.mxu1 %v540_v57  ;;  %v668_v61 = vmul.f32 %v1067_v60, %v1447_v23  ;;  %v1069_v21 = vpop.eup %1068  ;;  %878 = vmatpush.msra.mxu2 %v858_v54  ;;  %v855_v57 = vld [vmem:[%s1574_s9 + $0x20] sm:$0xff] }
 0x694   :  { %993 = vmatmul.msk.f32.vlgmr.msra.gmra.mxu1 %vm160_vm1, %v538_v55  ;;  %996 = vmatmul.msk.f32.vlgmr.msra.gmra.mxu0 %vm160_vm1, %v603_v56  ;;  %v756_v22 = vmul.f32 32.0, %v1069_v21  ;;  %vm760_vm4 = vweird.f32 %v1069_v21  ;;  %v857_v55 = vld [vmem:[%s1574_s9 + $0x30] sm:$0xff]  ;;  %v856_v56 = vld [vmem:[%s1574_s9 + $0x28] sm:$0xff] }
 0x695   :  { %690 = vmatpush.msrb.mxu1 %v670_v58  ;;  %879 = vmatpush.msra.mxu2 %v857_v55  ;;  %v854_v58 = vld [vmem:[%s1574_s9 + $0x18] sm:$0xff] }
 0x696   :  { %v757_v23 = vsub.f32 1.0, %v756_v22 }
 0x697   :  { %880 = vmatpush.msra.mxu2 %v856_v56 }
 0x699   :  { %v497_v5 = vpop.f32.mrf.mxu0  ;;  %881 = vmatpush.msra.mxu2 %v855_v57 }
 0x69b   :  { %882 = vmatpush.msra.mxu2 %v854_v58 }
 0x69c   :  { %999 = vmatmul.msk.f32.vlgmr.msrb.gmra.mxu1 %vm160_vm1, %v668_v61 }
 0x69d   :  { %883 = vmatpush.msra.mxu2 %v853_v0 }
 0x6b4   :  { %v428_v2 = vpop.permute.xlu1 %427 }
 0x6b5   :  { %v434_v3 = vsel %vm433_vm3, %v432_v1, %v428_v2  ;;  %v852_v1 = vld [vmem:[%s1574_s9 + $0x8] sm:$0xff]  ;;  %v851_v2 = vld [vmem:[%s1574_s9] sm:$0xff] }
 0x6b6   :  { %1000 = vmatmul.msk.f32.vlgmr.msra.gmra.mxu3 %vm125_vm0, %v434_v3  ;;  %884 = vmatpush.msra.mxu2 %v852_v1  ;;  %v1032_v3 = vld [vmem:[#allocation7] ss:$0 sm:$0xff] }
 0x6b8   :  { %885 = vmatpush.msra.mxu2 %v851_v2 }
 0x711   :  { %v562_v6 = vpop.f32.mrf.mxu1  ;;  %v627_v8 = vpop.f32.mrf.mxu0 }
 0x712   :  { %696 = vrot.lane.b32.xlu2 %v562_v6, %s1234_s10  ;;  %700 = vrot.lane.b32.xlu0 %v627_v8, %s1248_s14 }
 0x719   :  { %v692_v9 = vpop.f32.mrf.mxu1 }
 0x71a   :  { %704 = vrot.lane.b32.xlu1 %v692_v9, %s1249_s8 }
 0x739   :  { %v741_v10 = vpop.f32.mrf.mxu3 }
 0x73a   :  { %v742_v11 = vadd.f32 %v1029_v25, %v741_v10 }
 0x73c   :  { %v747_v12 = vadd.f32 %v742_v11, %v1352_v4  ;;  %v758_v4 = vmul.f32 %v1069_v21, %v757_v23 }
 0x73e   :  { %v749_v13 = vsel %vm125_vm0, %v747_v12, 0.0  ;;  %v759_v7 = vadd.f32 %v1069_v21, %v758_v4 }
 0x73f   :  { %750 = vadd.xlane.f32.xlu2 %v749_v13 }
 0x740   :  { %v1493_v24 = vsel %vm760_vm4, %v1069_v21, %v759_v7  ;;  %v1033_v21 = vld [vmem:[#allocation8] ss:$0 sm:$0xff] }
 0x76c   :  { %v697_v14 = vpop.permute.xlu2 %696 }
 0x76d   :  { %v707_v16 = vsel %vm160_vm1, %v497_v5, %v697_v14 }
 0x784   :  { %v701_v15 = vpop.permute.xlu0 %700 }
 0x785   :  { %v708_v17 = vsel %vm431_vm2, %v707_v16, %v701_v15 }
 0x78c   :  { %v705_v18 = vpop.permute.xlu1 %704 }
 0x78d   :  { %v709_v19 = vsel %vm433_vm3, %v708_v17, %v705_v18 }
 0x78e   :  { %1001 = vmatmul.msk.f32.gmra.mxu3 %vm125_vm0, %v709_v19 }
 0x7b2   :  { %v751_v26 = vpop.xlane.xlu2 %750 }
 0x7b3   :  { %v762_v27 = vmul.f32 %v1493_v24, %v751_v26 }
 0x7b5   :  { %v764_v29 = vsub.f32 %v747_v12, %v762_v27 }
 0x7b7   :  { %v766_v30 = vmul.f32 %v764_v29, %v764_v29 }
 0x7b9   :  { %v768_v31 = vsel %vm125_vm0, %v766_v30, 0.0 }
 0x7ba   :  { %769 = vadd.xlane.f32.xlu1 %v768_v31 }
 0x811   :  { %v744_v32 = vpop.f32.mrf.mxu3 }
 0x812   :  { %v745_v33 = vadd.f32 %v1029_v25, %v744_v32 }
 0x814   :  { %v748_v34 = vadd.f32 %v745_v33, %v1392_v28  ;;  %v812_v28 = vld [vmem:[%s1572_s7] sm:$0xff] }
 0x815   :  { %841 = vmatpush.msrb.mxu0 %v812_v28 }
 0x816   :  { %v752_v35 = vsel %vm125_vm0, %v748_v34, 0.0 }
 0x817   :  { %753 = vadd.xlane.f32.xlu0 %v752_v35 }
 0x82d   :  { %v770_v40 = vpop.xlane.xlu1 %769 }
 0x82e   :  { %v774_v41 = vmul.f32 %v770_v40, %v1493_v24 }
 0x830   :  { %v776_v42 = vadd.f32 1e-05, %v774_v41 }
 0x832   :  { %1070 = vrsqrt.f32 %v776_v42  ;;  %vm784_vm6 = vweird.f32 %v776_v42 }
 0x838   :  { %v1071_v43 = vpop.eup %1070 }
 0x839   :  { %v779_v44 = vmul.f32 %v1071_v43, %v776_v42  ;;  %vm785_vm5 = vweird.f32 %v1071_v43 }
 0x83a   :  { %vm786_vm7 = vmor %vm784_vm6, %vm785_vm5 }
 0x83b   :  { %v780_v45 = vmul.f32 %v1071_v43, %v779_v44 }
 0x83d   :  { %v781_v46 = vmul.f32 0.5, %v780_v45 }
 0x83f   :  { %v782_v47 = vsub.f32 1.5, %v781_v46 }
 0x841   :  { %v783_v48 = vmul.f32 %v1071_v43, %v782_v47 }
 0x843   :  { %v787_v50 = vsel %vm786_vm7, %v1071_v43, %v783_v48  ;;  %v1034_v48 = vld [vmem:[%s1576_s11] ss:$0 sm:$0xff]  ;;  %s1251_s11 = smov [#allocation11]  }
 0x844   :  { %v798_v51 = vmul.f32 %v787_v50, %v764_v29  ;;  %s957_s22 = sshll.u32 %s1251_s11, 4  ;;  %s958_s22 = int_to_ptr.vmem [resolvable:$true] %s957_s22 }
 0x846   :  { %v804_v36 = vmul.f32 %v1030_v49, %v798_v51  ;;  %v1035_v51 = vld [vmem:[#allocation10] ss:$0 sm:$0xff] }
 0x848   :  { %v810_v53 = vadd.f32 %v1031_v52, %v804_v36 }
 0x84a   :  { %1002 = vmatmul.msk.f32.vlgmr.msrb.gmra.mxu0 %vm125_vm0, %v810_v53 }
 0x88a   :  { %v754_v59 = vpop.xlane.xlu0 %753 }
 0x88b   :  { %v763_v60 = vmul.f32 %v1493_v24, %v754_v59 }
 0x88d   :  { %v765_v61 = vsub.f32 %v748_v34, %v763_v60 }
 0x88f   :  { %v767_v62 = vmul.f32 %v765_v61, %v765_v61 }
 0x891   :  { %v771_v63 = vsel %vm125_vm0, %v767_v62, 0.0 }
 0x892   :  { %772 = vadd.xlane.f32.xlu2 %v771_v63 }
 0x8c7   :  { %v843_v5 = vpop.f32.mrf.mxu0 }
 0x8c8   :  { %v844_v6 = vadd.f32 %v1032_v3, %v843_v5 }
 0x8ca   :  { %v849_v8 = vmax.f32 %v844_v6, 0.0 }
 0x8cc   :  { %1004 = vmatmul.msk.f32.vlgmr.msra.gmra.mxu2 %vm863_vm8, %v849_v8 }
 0x905   :  { %v773_v9 = vpop.xlane.xlu2 %772 }
 0x906   :  { %v775_v25 = vmul.f32 %v773_v9, %v1493_v24 }
 0x908   :  { %v777_v10 = vadd.f32 1e-05, %v775_v25 }
 0x90a   :  { %1072 = vrsqrt.f32 %v777_v10  ;;  %vm794_vm10 = vweird.f32 %v777_v10 }
 0x910   :  { %v1073_v11 = vpop.eup %1072 }
 0x911   :  { %v789_v12 = vmul.f32 %v1073_v11, %v777_v10  ;;  %vm795_vm9 = vweird.f32 %v1073_v11 }
 0x912   :  { %vm796_vm11 = vmor %vm794_vm10, %vm795_vm9 }
 0x913   :  { %v790_v13 = vmul.f32 %v1073_v11, %v789_v12 }
 0x915   :  { %v791_v14 = vmul.f32 0.5, %v790_v13 }
 0x917   :  { %v792_v15 = vsub.f32 1.5, %v791_v14 }
 0x919   :  { %v793_v16 = vmul.f32 %v1073_v11, %v792_v15 }
 0x91b   :  { %v797_v17 = vsel %vm796_vm11, %v1073_v11, %v793_v16 }
 0x91c   :  { %v799_v18 = vmul.f32 %v797_v17, %v765_v61 }
 0x91e   :  { %v805_v19 = vmul.f32 %v1030_v49, %v799_v18 }
 0x920   :  { %v811_v20 = vadd.f32 %v1031_v52, %v805_v19 }
 0x922   :  { %1003 = vmatmul.msk.f32.gmra.mxu0 %vm125_vm0, %v811_v20 }
 0x94f   :  { %v887_v22 = vpop.f32.mrf.mxu2 }
 0x950   :  { %v888_v23 = vadd.f32 %v1033_v21, %v887_v22 }
 0x952   :  { %v893_v4 = vadd.f32 %v888_v23, %v810_v53 }
 0x954   :  { %v895_v7 = vsel %vm125_vm0, %v893_v4, 0.0 }
 0x955   :  { %896 = vadd.xlane.f32.xlu0 %v895_v7 }
 0x99f   :  { %v846_v26 = vpop.f32.mrf.mxu0 }
 0x9a0   :  { %v847_v27 = vadd.f32 %v1032_v3, %v846_v26 }
 0x9a2   :  { %v850_v29 = vmax.f32 %v847_v27, 0.0 }
 0x9a4   :  { %1005 = vmatmul.msk.f32.gmra.mxu2 %vm863_vm8, %v850_v29 }
 0x9c8   :  { %v897_v30 = vpop.xlane.xlu0 %896 }
 0x9c9   :  { %v901_v31 = vmul.f32 %v897_v30, %v1493_v24 }
 0x9cb   :  { %v903_v32 = vsub.f32 %v893_v4, %v901_v31 }
 0x9cd   :  { %v905_v33 = vmul.f32 %v903_v32, %v903_v32 }
 0x9cf   :  { %v907_v34 = vsel %vm125_vm0, %v905_v33, 0.0 }
 0x9d0   :  { %908 = vadd.xlane.f32.xlu2 %v907_v34 }
 0xa27   :  { %v890_v35 = vpop.f32.mrf.mxu2 }
 0xa28   :  { %v891_v37 = vadd.f32 %v1033_v21, %v890_v35 }
 0xa2a   :  { %v894_v38 = vadd.f32 %v891_v37, %v811_v20 }
 0xa2c   :  { %v898_v39 = vsel %vm125_vm0, %v894_v38, 0.0 }
 0xa2d   :  { %899 = vadd.xlane.f32.xlu1 %v898_v39 }
 0xa43   :  { %v909_v28 = vpop.xlane.xlu2 %908 }
 0xa44   :  { %v913_v40 = vmul.f32 %v909_v28, %v1493_v24 }
 0xa46   :  { %v915_v41 = vadd.f32 1e-05, %v913_v40 }
 0xa48   :  { %1074 = vrsqrt.f32 %v915_v41  ;;  %vm923_vm13 = vweird.f32 %v915_v41 }
 0xa4e   :  { %v1075_v42 = vpop.eup %1074 }
 0xa4f   :  { %v918_v43 = vmul.f32 %v1075_v42, %v915_v41  ;;  %vm924_vm12 = vweird.f32 %v1075_v42 }
 0xa50   :  { %vm925_vm14 = vmor %vm923_vm13, %vm924_vm12 }
 0xa51   :  { %v919_v44 = vmul.f32 %v1075_v42, %v918_v43 }
 0xa53   :  { %v920_v45 = vmul.f32 0.5, %v919_v44 }
 0xa55   :  { %v921_v46 = vsub.f32 1.5, %v920_v45 }
 0xa57   :  { %v922_v47 = vmul.f32 %v1075_v42, %v921_v46 }
 0xa59   :  { %v926_v49 = vsel %vm925_vm14, %v1075_v42, %v922_v47 }
 0xa5a   :  { %v937_v50 = vmul.f32 %v926_v49, %v903_v32 }
 0xa5c   :  { %v943_v52 = vmul.f32 %v1034_v48, %v937_v50 }
 0xa5e   :  { %v949_v36 = vadd.f32 %v1035_v51, %v943_v52 }
 0xa60   :  { %951 = vst.msk [vmem:[#allocation11] sm:$0xff] %vm125_vm0, %v949_v36 }
 0xaa0   :  { %v900_v53 = vpop.xlane.xlu1 %899 }
 0xaa1   :  { %v902_v54 = vmul.f32 %v900_v53, %v1493_v24 }
 0xaa3   :  { %v904_v55 = vsub.f32 %v894_v38, %v902_v54 }
 0xaa5   :  { %v906_v56 = vmul.f32 %v904_v55, %v904_v55 }
 0xaa7   :  { %v910_v57 = vsel %vm125_vm0, %v906_v56, 0.0 }
 0xaa8   :  { %911 = vadd.xlane.f32.xlu0 %v910_v57 }
 0xb1b   :  { %v912_v58 = vpop.xlane.xlu0 %911 }
 0xb1c   :  { %v914_v59 = vmul.f32 %v912_v58, %v1493_v24 }
 0xb1e   :  { %v916_v60 = vadd.f32 1e-05, %v914_v59 }
 0xb20   :  { %1076 = vrsqrt.f32 %v916_v60  ;;  %vm933_vm1 = vweird.f32 %v916_v60 }
 0xb26   :  { %v1077_v61 = vpop.eup %1076 }
 0xb27   :  { %v928_v62 = vmul.f32 %v1077_v61, %v916_v60  ;;  %vm934_vm15 = vweird.f32 %v1077_v61 }
 0xb28   :  { %vm935_vm2 = vmor %vm933_vm1, %vm934_vm15 }
 0xb29   :  { %v929_v63 = vmul.f32 %v1077_v61, %v928_v62 }
 0xb2b   :  { %v930_v0 = vmul.f32 0.5, %v929_v63 }
 0xb2d   :  { %v931_v1 = vsub.f32 1.5, %v930_v0 }
 0xb2f   :  { %v932_v2 = vmul.f32 %v1077_v61, %v931_v1 }
 0xb31   :  { %v936_v3 = vsel %vm935_vm2, %v1077_v61, %v932_v2 }
 0xb32   :  { %v938_v5 = vmul.f32 %v936_v3, %v904_v55 }
 0xb34   :  { %v944_v24 = vmul.f32 %v1034_v48, %v938_v5 }
 0xb36   :  { %v950_v6 = vadd.f32 %v1035_v51, %v944_v24 }
 0xb38   :  { %952 = vst.msk [vmem:[#allocation11 + $0x8] sm:$0xff] %vm125_vm0, %v950_v6 }
 0xb39   :  { %965 = dma.vmem_to_hbm [thread:$0]  %s958_s22, 256, %s960_s2, [#allocation4], %s1233_s25, %s1233_s25, %s1234_s10  }
 0xb3a   :  { %1228 = dma.done.wait [#allocation4], 256  }
 0xb3b   :  { %1229 = vsyncadd [#allocation4], 4294967040 }
 0xb3c   :  { %970 = vsyncpa [#allocation3], 1 }
 0xb3d   :  { %971 = vsyncpa [#allocation6], 1 }
 0xb3e   :  { %972 = vsyncpa [#allocation9], 1 }
 0xb3f   :  { %973 = vsyncpa [#allocation4], 1 }

</bundles_post_ra>
